<compile_context>
chip_gen: v5e
topology: v5e:2x2
jax: 0.10.0
libtpu: 0.0.40
codegen_flags: <defaults>
</compile_context>

<pallas_src>
import functools
import math

import jax
import jax.numpy as jnp
from jax.experimental import pallas as pl
from jax.experimental.pallas import tpu as pltpu


def _round_up(x, n):
    return ((x + n - 1) // n) * n


def _pick_tile_b(batch, requested):
    """Multiple-of-16 batch tile (bf16 sublane packing) + padded batch size."""
    t = max(16, (requested // 16) * 16)
    t = min(t, _round_up(batch, 16))
    return t, _round_up(batch, t)


def _pick_tile_c(n_classes, requested):
    """Multiple-of-128 class tile; prefer one that divides C (no C padding)."""
    cap = _round_up(n_classes, 128)
    t = min(max(128, (requested // 128) * 128), cap)
    if n_classes % t == 0:
        return t, n_classes
    if n_classes % 128 == 0:                 # largest multiple-of-128 divisor <= t
        for cand in range(t, 0, -128):
            if n_classes % cand == 0:
                return cand, n_classes
    return t, _round_up(n_classes, t)


# ---------------------------------------------------------------------------
# Pre-pass kernels
# ---------------------------------------------------------------------------

def _fnorm_kernel(feat_ref, out_ref):
    """Row-normalize one (TILE_B, D) feature tile; emit bf16."""
    f = feat_ref[...].astype(jnp.float32)
    inv = jax.lax.rsqrt(jnp.maximum(jnp.sum(f * f, axis=1, keepdims=True), 1e-24))
    out_ref[...] = (f * inv).astype(out_ref.dtype)


def _wnorm_kernel(w_ref, out_ref, *, tile_c, n_classes, mask_tail):
    """Column-normalize one (D, TILE_C) tile read from the *unpadded* W and
    emit it as bf16 into the padded output (tail columns zeroed)."""
    w = w_ref[...].astype(jnp.float32)
    if mask_tail:
        col = (jax.lax.broadcasted_iota(jnp.int32, w.shape, 1)
               + pl.program_id(0) * tile_c)
        w = jnp.where(col < n_classes, w, 0.0)   # kill undefined tail-tile data
    inv = jax.lax.rsqrt(jnp.maximum(jnp.sum(w * w, axis=0, keepdims=True), 1e-24))
    out_ref[...] = (w * inv).astype(out_ref.dtype)


def _normalize_features(features_padded, *, tile_b):
    Bp, D = features_padded.shape
    return pl.pallas_call(
        _fnorm_kernel,
        out_shape=jax.ShapeDtypeStruct((Bp, D), jnp.bfloat16),
        grid=(Bp // tile_b,),
        in_specs=[pl.BlockSpec((tile_b, D), lambda i: (i, 0))],
        out_specs=pl.BlockSpec((tile_b, D), lambda i: (i, 0)),
        compiler_params=pltpu.CompilerParams(dimension_semantics=("parallel",)),
    )(features_padded)


def _normalize_weights(w, *, tile_c, c_padded):
    """Unpadded (D, C) f32 W -> padded (D, Cp) bf16 column-normalized W."""
    D, C = w.shape
    kernel = functools.partial(_wnorm_kernel, tile_c=tile_c, n_classes=C,
                               mask_tail=(c_padded != C))
    return pl.pallas_call(
        kernel,
        out_shape=jax.ShapeDtypeStruct((D, c_padded), jnp.bfloat16),
        grid=(c_padded // tile_c,),
        in_specs=[pl.BlockSpec((D, tile_c), lambda j: (0, j))],
        out_specs=pl.BlockSpec((D, tile_c), lambda j: (0, j)),
        compiler_params=pltpu.CompilerParams(dimension_semantics=("parallel",)),
    )(w)


# ---------------------------------------------------------------------------
# Main kernel
# ---------------------------------------------------------------------------

def _margin_epilogue(cos_theta, labels, col0, *, s, m):
    """PyTorch-faithful ArcFace epilogue on an f32 (TILE_B, TILE_C) tile."""
    clamped = jnp.clip(cos_theta, -1.0 + 1e-5, 1.0 - 1e-5)
    col = jax.lax.broadcasted_iota(jnp.int32, cos_theta.shape, 1) + col0
    mask = col == labels                                     # labels: (TILE_B, 1)
    # After the clip, 1 - c^2 >= ~2e-5, so no max(..., 0) guard is needed.
    sin_theta = jnp.sqrt(1.0 - clamped * clamped)
    cos_theta_plus_m = clamped * math.cos(m) - sin_theta * math.sin(m)
    # clamp(theta + m, 1e-5, pi): lower clamp never active (theta >= acos(1-1e-5));
    # upper clamp: theta + m > pi  <=>  clamped < cos(pi - m)  =>  cos(theta_m) = -1.
    label_val = jnp.where(clamped >= math.cos(math.pi - m), cos_theta_plus_m, -1.0)
    cos_theta_m = jnp.where(mask, label_val, clamped)
    # s * (cos_theta + (cos(theta_m) - cos_theta)) == s * cos(theta_m).
    return s * cos_theta_m


def _arcface_prenorm_kernel(labels_ref, fn_ref, wn_ref, out_ref, *, s, m, tile_c):
    j = pl.program_id(0)                                     # class tile (outer axis)
    cos_theta = jnp.dot(fn_ref[...], wn_ref[...],
                        preferred_element_type=jnp.float32)  # (TB, TC) f32
    out_ref[...] = _margin_epilogue(cos_theta, labels_ref[...], j * tile_c,
                                    s=s, m=m).astype(out_ref.dtype)


def _arcface_fused_kernel(labels_ref, fn_ref, w_ref, out_ref, *,
                          s, m, tile_c, n_classes, mask_tail):
    """Same as above but normalizes the raw f32 weight tile in-kernel."""
    j = pl.program_id(0)
    w = w_ref[...].astype(jnp.float32)
    if mask_tail:
        col = jax.lax.broadcasted_iota(jnp.int32, w.shape, 1) + j * tile_c
        w = jnp.where(col < n_classes, w, 0.0)               # undefined tail data
    inv = jax.lax.rsqrt(jnp.maximum(jnp.sum(w * w, axis=0, keepdims=True), 1e-24))
    wn = (w * inv).astype(jnp.bfloat16)
    cos_theta = jnp.dot(fn_ref[...], wn, preferred_element_type=jnp.float32)
    out_ref[...] = _margin_epilogue(cos_theta, labels_ref[...], j * tile_c,
                                    s=s, m=m).astype(out_ref.dtype)


# ---------------------------------------------------------------------------
# Wrapper
# ---------------------------------------------------------------------------

def arcface_forward(features, w, labels=None, *, s=64.0, m=0.5,
                    tile_b=256, tile_c=1024, out_dtype=jnp.float32,
                    wnorm_mode="auto"):
    """ArcFace logits.  features: (B, D), w: (D, C), labels: (B,) int or None.

    Returns (B, C) logits of dtype `out_dtype` (bf16 halves the output HBM
    stream but costs ~0.25 ULP near |logit| = s = 64).

    VMEM: the pipeline double-buffers a (D, tile_c) weight tile (bf16 or f32),
    a (tile_b, tile_c) output tile and a (tile_b, D) bf16 feature tile; the
    explicit vmem_limit below is derived from that footprint.  Keep it under
    ~48 MiB when targeting v7x (64 MiB physical VMEM) — the (256, 1024)
    defaults need only a few MiB even for D = 1024.
    """
    B, D = features.shape
    D2, C = w.shape
    assert D == D2, "feature / weight feature-dim mismatch"
    if wnorm_mode not in ("auto", "fused", "prenorm"):
        raise ValueError(f"bad wnorm_mode: {wnorm_mode}")

    tile_b, Bp = _pick_tile_b(B, tile_b)
    tile_c, Cp = _pick_tile_c(C, tile_c)
    n_b_tiles = Bp // tile_b
    n_c_tiles = Cp // tile_c

    # labels=None: PyTorch returns s*cos_theta; with an all-(-1) label vector we
    # return s*clamp(cos_theta, +-(1-1e-5)) — differs by at most s*1e-5.
    if labels is None:
        labels = jnp.full((B,), -1, dtype=jnp.int32)

    # Features / labels are tiny, so wrapper-side padding is free.
    # (W is never padded or copied in the wrapper — see below.)
    feats_p = jnp.pad(features, ((0, Bp - B), (0, 0)))
    labels_p = jnp.pad(labels.astype(jnp.int32), (0, Bp - B),
                       constant_values=-1).reshape(Bp, 1)

    # Hoisted feature normalization (bf16 f_n): keeps the main body to matmul +
    # epilogue and lets the class axis be the megacore-parallel axis on v7x.
    f_n = _normalize_features(feats_p, tile_b=tile_b)

    if wnorm_mode == "auto":
        wnorm_mode = "fused" if n_b_tiles <= 2 else "prenorm"

    if wnorm_mode == "fused":
        # Normalize each weight tile inside the main kernel: W is read from HBM
        # exactly once (4 B/elem) with no intermediate bf16 round trip.
        w_arg = w
        w_itemsize = jnp.dtype(w.dtype).itemsize
        kernel = functools.partial(_arcface_fused_kernel, s=s, m=m, tile_c=tile_c,
                                   n_classes=C, mask_tail=(Cp != C))
    else:
        # Hoisted one-shot bf16 column normalization (reads unpadded W once).
        w_arg = _normalize_weights(w, tile_c=tile_c, c_padded=Cp)
        w_itemsize = 2
        kernel = functools.partial(_arcface_prenorm_kernel, s=s, m=m, tile_c=tile_c)

    out_itemsize = jnp.dtype(out_dtype).itemsize
    # Double-buffered per-step VMEM footprint + headroom (explicit per review).
    vmem_need = 2 * (D * tile_c * w_itemsize + tile_b * tile_c * out_itemsize
                     + tile_b * D * 2 + tile_b * 4)
    vmem_limit = int(min(max(vmem_need + (4 << 20), 32 << 20), 112 << 20))

    cost = pl.CostEstimate(
        flops=2 * Bp * D * Cp,
        transcendentals=Bp * Cp,                              # sqrt in the epilogue
        bytes_accessed=(D * C * w_itemsize + Bp * D * 2 + Bp * 4
                        + Bp * Cp * out_itemsize))

    out = pl.pallas_call(
        kernel,
        out_shape=jax.ShapeDtypeStruct((Bp, Cp), out_dtype),
        # Class axis OUTER + "parallel": (a) the weight tile's block index is
        # constant across the inner batch sweep, so the pipeline streams W from
        # HBM once per forward; (b) on v7x the two TensorCores split the class
        # axis, each touching a disjoint half of W.  Batch inner is "arbitrary"
        # so megacore sharding never lands on it.
        grid=(n_c_tiles, n_b_tiles),
        in_specs=[
            pl.BlockSpec((tile_b, 1), lambda j, i: (i, 0)),   # labels (int32)
            pl.BlockSpec((tile_b, D), lambda j, i: (i, 0)),   # f_n (bf16)
            pl.BlockSpec((D, tile_c), lambda j, i: (0, j)),   # W (f32) or w_n (bf16)
        ],
        out_specs=pl.BlockSpec((tile_b, tile_c), lambda j, i: (i, j)),
        compiler_params=pltpu.CompilerParams(
            dimension_semantics=("parallel", "arbitrary"),
            vmem_limit_bytes=vmem_limit),
        cost_estimate=cost,
    )(labels_p, f_n, w_arg)

    # Slice only when padding was unavoidable (tile_c is picked to divide C
    # whenever C is a multiple of 128, so normally only rows — or nothing —
    # get sliced).
    if Bp != B or Cp != C:
        out = out[:B, :C]
    return out


def arcface_reference(features, w, labels, *, s=64.0, m=0.5,
                      matmul_dtype=jnp.float32):
    """Plain-JAX transcription of the PyTorch forward (acos/cos formulation).

    matmul_dtype=bf16 mimics the kernel's bf16-operand / f32-accumulate MXU
    matmul so the kernel can be checked with a tight tolerance.
    """
    w_n = w / jnp.maximum(jnp.linalg.norm(w, axis=0, keepdims=True), 1e-12)
    f_n = features / jnp.maximum(
        jnp.linalg.norm(features, axis=1, keepdims=True), 1e-12)
    cos_theta = jnp.dot(f_n.astype(matmul_dtype).astype(jnp.float32),
                        w_n.astype(matmul_dtype).astype(jnp.float32),
                        precision=jax.lax.Precision.HIGHEST)
    theta = jnp.arccos(jnp.clip(cos_theta, -1.0 + 1e-5, 1.0 - 1e-5))
    onehot = jax.nn.one_hot(labels, w.shape[1], dtype=cos_theta.dtype)
    theta_m = jnp.clip(theta + m * onehot, 1e-5, math.pi)
    d_theta = jnp.cos(theta_m) - cos_theta
    return s * (cos_theta + d_theta)


if __name__ == "__main__":
    key = jax.random.PRNGKey(0)

    # (B, D, C, tile_b, tile_c, wnorm_mode): small shapes that still exercise
    # multi-tile grids, both weight-norm paths and the unaligned-C masking.
    configs = [
        (48, 32, 512, 16, 128, "auto"),      # 4x3 grid, auto -> hoisted bf16 w-norm
        (16, 32, 512, 256, 1024, "auto"),    # 1x1 grid, auto -> fused in-kernel w-norm
        (16, 32, 500, 16, 128, "fused"),     # C % 128 != 0: fused tail masking + C slice
        (40, 32, 500, 16, 128, "prenorm"),   # C % 128 != 0: pre-pass tail masking + B pad
    ]

    for (B, D, C, tb, tc, mode) in configs:
        key, k_feat, k_w, k_lab = jax.random.split(key, 4)
        features = jax.random.normal(k_feat, (B, D), dtype=jnp.float32)
        # xavier_normal_ on an (in_features, out_features) tensor.
        xavier_std = math.sqrt(2.0 / (D + C))
        w = xavier_std * jax.random.normal(k_w, (D, C), dtype=jnp.float32)
        labels = jax.random.randint(k_lab, (B,), 0, C, dtype=jnp.int32)

        logits = arcface_forward(features, w, labels, s=64.0, m=0.5,
                                 tile_b=tb, tile_c=tc, wnorm_mode=mode)
        logits = jax.block_until_ready(logits)
        assert logits.shape == (B, C), (logits.shape, (B, C))

        # Tight check vs a reference whose matmul operands are also rounded to
        # bf16 (isolates kernel correctness from the intentional MXU cast).
        ref_bf16 = arcface_reference(features, w, labels, s=64.0, m=0.5,
                                     matmul_dtype=jnp.bfloat16)
        assert jnp.allclose(logits, ref_bf16, atol=0.1, rtol=1e-4), (
            f"mismatch vs bf16-matched reference, config={(B, D, C, tb, tc, mode)}")

        # Loose check vs the pure-f32 PyTorch-faithful reference (bf16 operand
        # rounding amplified by s=64 stays within a few tenths).
        ref_f32 = arcface_reference(features, w, labels, s=64.0, m=0.5)
        assert jnp.allclose(logits, ref_f32, atol=1.0, rtol=0.0), (
            f"mismatch vs f32 reference, config={(B, D, C, tb, tc, mode)}")

    print("KERNEL_OK")
</pallas_src>

<mosaic_0001>
module attributes {stable_mosaic.version = 11 : i64} {
  func.func @_fnorm_kernel(%arg0: i32, %arg1: memref<16x32xf32, #tpu.memory_space<vmem>>, %arg2: memref<16x32xbf16, #tpu.memory_space<vmem>>) attributes {dimension_semantics = [#tpu.dimension_semantics<parallel>], iteration_bounds = array<i64: 3>, scalar_prefetch = 0 : i64, scratch_operands = 0 : i64, tpu.core_type = #tpu.core_type<tc>, window_params = [{transform_indices = @transform_0, window_bounds = array<i64: 16, 32>}, {transform_indices = @transform_1, window_bounds = array<i64: 16, 32>}]} {
    %c0 = arith.constant 0 : index
    %c0_0 = arith.constant 0 : index
    %0 = vector.load %arg1[%c0, %c0_0] : memref<16x32xf32, #tpu.memory_space<vmem>>, vector<16x32xf32>
    %1 = arith.mulf %0, %0 : vector<16x32xf32>
    %cst = arith.constant dense<0.000000e+00> : vector<16xf32>
    %2 = vector.multi_reduction <add>, %1, %cst [1] : vector<16x32xf32> to vector<16xf32>
    %3 = vector.shape_cast %2 : vector<16xf32> to vector<16x1xf32>
    %cst_1 = arith.constant 1.000000e-24 : f32
    %4 = vector.broadcast %cst_1 : f32 to vector<16x1xf32>
    %5 = arith.maximumf %3, %4 : vector<16x1xf32>
    %6 = math.rsqrt %5 : vector<16x1xf32>
    %7 = vector.broadcast %6 : vector<16x1xf32> to vector<16x32xf32>
    %8 = arith.mulf %0, %7 : vector<16x32xf32>
    %9 = arith.truncf %8 : vector<16x32xf32> to vector<16x32xbf16>
    %c0_2 = arith.constant 0 : index
    %c0_3 = arith.constant 0 : index
    %10 = vector.load %arg2[%c0_2, %c0_3] : memref<16x32xbf16, #tpu.memory_space<vmem>>, vector<16x32xbf16>
    tpu.vector_store %arg2[%c0_2, %c0_3], %9 {strides = array<i32>} : memref<16x32xbf16, #tpu.memory_space<vmem>>, vector<16x32xbf16>,
    return
  }
  func.func @transform_0(%arg0: i32) -> (i32, i32) {
    %c0_i32 = arith.constant 0 : i32
    %c0_i32_0 = arith.constant 0 : i32
    return %arg0, %c0_i32 : i32, i32
  }
  func.func @transform_1(%arg0: i32) -> (i32, i32) {
    %c0_i32 = arith.constant 0 : i32
    %c0_i32_0 = arith.constant 0 : i32
    return %arg0, %c0_i32 : i32, i32
  }
}

</mosaic_0001>

<bundles_post_ra>
// kernel: tpu_custom_call.1
= control target key start
LH: loop header
LB: loop body
LE: loop exit
PB: predicated region body
PF: predicated region fallthrough
CT: control target
= control target key end

     0   :  { %s257_s6 = smov 0   ;;  %s278_s0 = inlined_call_operand.vmem [shape: f32[48,32], index: 0, kind: input, shape index: {}]   ;;  %s279_s1 = inlined_call_operand.vmem [shape: bf16[48,32], index: 1, kind: output, shape index: {}]  }
   0x1 LB: > { %s216_s7 = sadd.s32 4294967295, %s245_s6   ;;  %p220_p0 = scmp.ge.s32.totalorder %s245_s6, 1  ;;  %s245_s6 = sphi %s257_s6, %s11_s6  }
   0x2   : > { %p88_p1 = scmp.lt.s32.totalorder %s245_s6, 4 }
   0x4   : > { %p89_p2 = pnand %p220_p0, %p88_p1 }
   0x5   : > { %s221_s8 = sshll.u32 (!%p89_p2), %s216_s7, 1 }
   0x6   : > { %92 = sbr.rel (%p89_p2) target bundleno = 167 (0xa7), region = 24  ;;  %p109_p3 = scmp.lt.s32.totalorder (!%p89_p2), %s221_s8, 5 }
   0xb   : > { %s281_s8 = smov (!%p109_p3, %s221_s8), 5  ;;  %vm124_vm0 = vcmask 261120   ;;  %vm157_vm4 = vcmask 257024  }
   0xc   : > { %s222_s9 = sshll.u32 %s281_s8, 3  ;;  %s224_s13 = sshll.u32 %s281_s8, 2 }
   0xd   : > { %s112_s12 = scalar_lea.vmem %s278_s0, %s222_s9  ;;  %s118_s16 = scalar_lea.vmem %s279_s1, %s224_s13 }
   0xe   : > { %v120_v0 = vld [vmem:[%s112_s12] sm:$0xff]  ;;  %v121_v2 = vld [vmem:[%s112_s12 + $0x8] sm:$0xff] }
   0xf   : > { %v122_v1 = vmul.f32 %v120_v0, %v120_v0  ;;  %v123_v4 = vmul.f32 %v121_v2, %v121_v2 }
  0x11   : > { %v125_v3 = vsel %vm124_vm0, %v122_v1, 0.0  ;;  %v128_v5 = vsel %vm124_vm0, %v123_v4, 0.0 }
  0x12   : > { %126 = vadd.xlane.f32.xlu0 %v125_v3 }
  0x1a   : > { %129 = vadd.xlane.f32.xlu0 %v128_v5 }
  0x85   : > { %v127_v6 = vpop.xlane.xlu0 %126 }
  0x86   : > { %v131_v7 = vmax.f32 %v127_v6, 1e-24 }
  0x88   : > { %235 = vrsqrt.f32 %v131_v7  ;;  %vm139_vm2 = vweird.f32 %v131_v7 }
  0x8d   : > { %v130_v8 = vpop.xlane.xlu0 %129 }
  0x8e   : > { %v236_v9 = vpop.eup %235  ;;  %v132_v10 = vmax.f32 %v130_v8, 1e-24 }
  0x8f   : > { %v134_v11 = vmul.f32 %v236_v9, %v131_v7  ;;  %vm140_vm1 = vweird.f32 %v236_v9 }
  0x90   : > { %237 = vrsqrt.f32 %v132_v10  ;;  %vm141_vm3 = vmor %vm139_vm2, %vm140_vm1  ;;  %vm149_vm6 = vweird.f32 %v132_v10 }
  0x91   : > { %v135_v12 = vmul.f32 %v236_v9, %v134_v11 }
  0x93   : > { %v136_v13 = vmul.f32 0.5, %v135_v12 }
  0x95   : > { %v137_v14 = vsub.f32 1.5, %v136_v13 }
  0x96   : > { %v238_v15 = vpop.eup %237 }
  0x97   : > { %v138_v16 = vmul.f32 %v236_v9, %v137_v14  ;;  %v144_v17 = vmul.f32 %v238_v15, %v132_v10  ;;  %vm150_vm5 = vweird.f32 %v238_v15 }
  0x98   : > { %vm151_vm7 = vmor %vm149_vm6, %vm150_vm5 }
  0x99   : > { %v142_v18 = vsel %vm141_vm3, %v236_v9, %v138_v16  ;;  %v145_v19 = vmul.f32 %v238_v15, %v144_v17 }
  0x9a   : > { %v153_v20 = vmul.f32 %v142_v18, %v120_v0 }
  0x9b   : > { %v146_v21 = vmul.f32 0.5, %v145_v19 }
  0x9c   : > { %v155_v22 = vpack.c.bf16 %v153_v20, %v153_v20 }
  0x9d   : > { %v147_v23 = vsub.f32 1.5, %v146_v21 }
  0x9e   : > { %158 = vst.msk [vmem:[%s118_s16] sm:$0xf] %vm157_vm4, %v155_v22 }
  0x9f   : > { %v148_v24 = vmul.f32 %v238_v15, %v147_v23 }
  0xa1   : > { %v152_v25 = vsel %vm151_vm7, %v238_v15, %v148_v24 }
  0xa2   : > { %v154_v26 = vmul.f32 %v152_v25, %v121_v2 }
  0xa4   : > { %v156_v27 = vpack.c.bf16 %v154_v26, %v154_v26 }
  0xa6   : > { %159 = vst.msk [vmem:[%s118_s16 + $0x4] sm:$0xf] %vm157_vm4, %v156_v27 }
  0xa7 PF: > { %s11_s6 = sadd.s32 1, %s245_s6  }
  0xa8   : > { %p8_p4 = scmp.ge.s32.totalorder %s11_s6, 5  }
  0xaa   :  { %10 = sbr.rel (!%p8_p4) target bundleno = 1 (0x1), region = 54 }

</bundles_post_ra>
